<compile_context>
chip_gen: v7x
topology: tpu7x:2x2x1
jax: 0.10.0
libtpu: 0.0.40
codegen_flags: <defaults>
</compile_context>

<pallas_src>
import functools

import jax
import jax.numpy as jnp
from jax.experimental import pallas as pl
from jax.experimental.pallas import tpu as pltpu


_X_SHAPE = (2, 2)
_KW_X_SHAPE = (1, 2)
_X_N = _X_SHAPE[0] * _X_SHAPE[1]          # 4
_KW_N = _KW_X_SHAPE[0] * _KW_X_SHAPE[1]   # 2
_TILE = (8, 128)                          # one full f32 vreg -> unmasked vst


def _fused_add_one_kernel(buf_ref, out_ref):
    # Single VPU vadd over one lane-dense tile holding both tensors.
    out_ref[...] = buf_ref[...] + jnp.float32(1.0)


@jax.jit
def wrapper_module_forward(x, kw_x):
    """Equivalent of WrapperModule().forward() given the (default) tensors.

    Returns (x + 1, kw_x + 1). The in-place `add_` semantics of the PyTorch
    module are emulated by aliasing the fused kernel buffer in/out; callers
    wanting true buffer reuse of their own arrays should donate them at their
    jit boundary.
    """
    # --- pack: both tensors into row 0 of one (8, 128) f32 tile (fused by XLA)
    flat = jnp.concatenate(
        [x.reshape(-1).astype(jnp.float32), kw_x.reshape(-1).astype(jnp.float32)]
    )  # (6,)
    buf = jnp.zeros(_TILE, dtype=jnp.float32).at[0, : _X_N + _KW_N].set(flat)

    out = pl.pallas_call(
        _fused_add_one_kernel,
        out_shape=jax.ShapeDtypeStruct(_TILE, jnp.float32),
        in_specs=[pl.BlockSpec(memory_space=pltpu.MemorySpace.VMEM)],
        out_specs=pl.BlockSpec(memory_space=pltpu.MemorySpace.VMEM),
        input_output_aliases={0: 0},  # reuse the packed buffer for the result
    )(buf)

    # --- unpack: slice the two results back out
    out_flat = out[0, : _X_N + _KW_N]
    x_out = out_flat[:_X_N].reshape(_X_SHAPE).astype(x.dtype)
    kw_x_out = out_flat[_X_N:].reshape(_KW_X_SHAPE).astype(kw_x.dtype)
    return x_out, kw_x_out


if __name__ == "__main__":
    # The PyTorch module uses default tensor args: zeros((2,2)) and zeros((1,2)).
    # Those are deterministic; PRNGKey(0) is created for protocol consistency
    # but the forward takes no external data.
    _ = jax.random.PRNGKey(0)
    x = jnp.zeros(_X_SHAPE, dtype=jnp.float32)
    kw_x = jnp.zeros(_KW_X_SHAPE, dtype=jnp.float32)

    out_x, out_kw_x = wrapper_module_forward(x, kw_x)
    jax.block_until_ready((out_x, out_kw_x))

    # Reference semantics: first call on fresh defaults -> all ones.
    assert out_x.shape == _X_SHAPE and out_kw_x.shape == _KW_X_SHAPE
    assert bool(jnp.all(out_x == 1.0)) and bool(jnp.all(out_kw_x == 1.0))
    print("KERNEL_OK")
</pallas_src>

<mosaic_0001>
module attributes {stable_mosaic.version = 11 : i64} {
  func.func @_fused_add_one_kernel(%arg0: memref<8x128xf32, #tpu.memory_space<vmem>>, %arg1: memref<8x128xf32, #tpu.memory_space<vmem>>) attributes {dimension_semantics = [], scalar_prefetch = 0 : i64, scratch_operands = 0 : i64, tpu.core_type = #tpu.core_type<tc>} {
    %c0 = arith.constant 0 : index
    %c0_0 = arith.constant 0 : index
    %0 = vector.load %arg0[%c0, %c0_0] : memref<8x128xf32, #tpu.memory_space<vmem>>, vector<8x128xf32>
    %cst = arith.constant 1.000000e+00 : f32
    %1 = vector.broadcast %cst : f32 to vector<8x128xf32>
    %2 = arith.addf %0, %1 : vector<8x128xf32>
    %c0_1 = arith.constant 0 : index
    %c0_2 = arith.constant 0 : index
    %3 = vector.load %arg1[%c0_1, %c0_2] : memref<8x128xf32, #tpu.memory_space<vmem>>, vector<8x128xf32>
    tpu.vector_store %arg1[%c0_1, %c0_2], %2 {strides = array<i32>} : memref<8x128xf32, #tpu.memory_space<vmem>>, vector<8x128xf32>,
    return
  }
}

</mosaic_0001>

<bundles_post_ra>
// kernel: wrapper_module_forward.1
= control target key start
LH: loop header
LB: loop body
LE: loop exit
PB: predicated region body
PF: predicated region fallthrough
CT: control target
= control target key end

     0   :  { %s31_s0 = inlined_call_operand.vmem [shape: f32[8,128], index: 0, kind: input, shape index: {}, may-alias: {0,1}]   ;;  %s32_s1 = inlined_call_operand.vmem [shape: f32[8,128], index: 1, kind: output, shape index: {}, may-alias: {0,1}]  }
   0x1   :  { %v8_v0 = vld [vmem:[%s31_s0] sm:$0xff] }
   0x2   :  { %v9_v1 = vadd.f32 1.0, %v8_v0 }
   0x4   :  { %10 = vst [vmem:[%s32_s1] sm:$0xff] %v9_v1 }

</bundles_post_ra>
